<compile_context>
chip_gen: v5e
topology: v5e:2x2
jax: 0.10.0
libtpu: 0.0.40
codegen_flags: <defaults>
</compile_context>

<pallas_src>
import functools

import jax
import jax.numpy as jnp
from jax.experimental import pallas as pl
from jax.experimental.pallas import tpu as pltpu


def _round_up(x, m):
    return (x + m - 1) // m * m


def _as_pair(v):
    if isinstance(v, (list, tuple)):
        return int(v[0]), int(v[1])
    return int(v), int(v)


def _gemm_bn_pprelu_kernel(p_ref, w_ref, prm_ref, o_ref):
    """One (batch, M-tile, Cout-tile) grid step.

    p_ref:   (1, TM, Kc_p)  bf16 im2col patches (rows of the flattened Ho*Wo)
    w_ref:   (Kc_p, TC)     bf16 BN-folded conv weights, (kh, kw, cin)-major
    prm_ref: (8, TC)        f32 params: row0 = BN bias, row1 = s1, row2 = s2
    o_ref:   (1, TM, TC)    output tile (bf16)
    """
    acc = jnp.dot(p_ref[0], w_ref[...],
                  preferred_element_type=jnp.float32)       # (TM, TC) f32

    bias = prm_ref[0:1, :]                                   # folded BN bias
    s1 = prm_ref[1:2, :]                                     # PPReLU scale1
    s2 = prm_ref[2:3, :]                                     # PPReLU scale2
    y = acc + bias
    y = jnp.maximum(y * s1, y * s2)                          # PPReLU
    o_ref[0] = y.astype(o_ref.dtype)


def conv2d_batch_pprelu(x_nchw, weight, gamma, beta, running_mean, running_var,
                        pprelu_s1, pprelu_s2, *, stride=1, eps=1e-5,
                        out_dtype=jnp.bfloat16):
    """x_nchw: (N, Cin, H, W); weight: (Cout, Cin, Kh, Kw) (PyTorch conventions)."""
    N, Cin, H, W = x_nchw.shape
    Cout, _, Kh, Kw = weight.shape
    sh, sw = _as_pair(stride)
    ph, pw = Kh // 2, Kw // 2
    Ho = (H + 2 * ph - Kh) // sh + 1
    Wo = (W + 2 * pw - Kw) // sw + 1

    # ---- im2col pre-pass in XLA (small-Cin path). --------------------------
    # NCHW -> NHWC, bf16, spatial zero-pad (conv padding = k//2), then Kh*Kw
    # shifted/strided taps concatenated on the channel axis -> (kh, kw, cin)-
    # major patches that feed a single deep GEMM inside the kernel.
    # TODO(synk): for large Cin, slice halo'd row bands inside the kernel
    #             instead (im2col inflates input bytes by Kh*Kw).
    x_nhwc = jnp.transpose(x_nchw, (0, 2, 3, 1)).astype(jnp.bfloat16)
    x_pad = jnp.pad(x_nhwc, ((0, 0), (ph, ph), (pw, pw), (0, 0)))
    taps = []
    for kh in range(Kh):
        for kw in range(Kw):
            taps.append(x_pad[:, kh:kh + (Ho - 1) * sh + 1:sh,
                              kw:kw + (Wo - 1) * sw + 1:sw, :])
    patches = jnp.concatenate(taps, axis=-1)      # (N, Ho, Wo, Kh*Kw*Cin)

    # ---- tiling choices -----------------------------------------------------
    M = Ho * Wo
    Kc = Kh * Kw * Cin
    Kc_p = _round_up(Kc, 16)                      # bf16 sublane pack (weights)
    TM = min(512, _round_up(M, 8))                # big M tile (>=512 target)
    M_p = _round_up(M, TM)

    if Cout < 128:
        TC = Cout                                 # no Cout padding: exact bytes
    elif Cout % 256 == 0:
        TC = 256                                  # fill 256-wide MXU (v6e/v7x)
    else:
        TC = 128
    Cout_p = _round_up(Cout, TC)

    patches = patches.reshape(N, M, Kc)
    patches = jnp.pad(patches, ((0, 0), (0, M_p - M), (0, Kc_p - Kc)))

    # ---- fold BatchNorm (inference, running stats) into the conv weights. ---
    bn_scale = (gamma / jnp.sqrt(running_var + eps)).astype(jnp.float32)
    bn_bias = (beta - running_mean * bn_scale).astype(jnp.float32)
    w = weight.astype(jnp.float32) * bn_scale[:, None, None, None]
    # (Cout, Cin, Kh, Kw) -> (Kh, Kw, Cin, Cout) -> (Kc_p, Cout_p), bf16.
    w = jnp.transpose(w, (2, 3, 1, 0)).reshape(Kc, Cout)
    w = jnp.pad(w, ((0, Kc_p - Kc), (0, Cout_p - Cout))).astype(jnp.bfloat16)

    # Pack BN bias + PPReLU scales into one (8, Cout_p) f32 array (one DMA).
    params = jnp.zeros((8, Cout_p), jnp.float32)
    params = params.at[0, :Cout].set(bn_bias)
    params = params.at[1, :Cout].set(pprelu_s1.astype(jnp.float32))
    params = params.at[2, :Cout].set(pprelu_s2.astype(jnp.float32))

    # ---- generation-aware VMEM budget ---------------------------------------
    try:
        vmem_cap = int(pltpu.get_tpu_info().vmem_capacity_bytes)
    except Exception:
        vmem_cap = 64 * 1024 * 1024               # conservative (v7x per-TC)
    vmem_limit = int(min(100 * 1024 * 1024, (vmem_cap * 3) // 4))

    grid = (N, M_p // TM, Cout_p // TC)           # Cout innermost: big patch
                                                  # tile stays resident.
    out_bytes = N * M_p * Cout_p * jnp.dtype(out_dtype).itemsize
    cost = pl.CostEstimate(
        flops=2 * N * M_p * Kc_p * Cout_p,
        transcendentals=0,
        bytes_accessed=N * M_p * Kc_p * 2 + Kc_p * Cout_p * 2
        + 8 * Cout_p * 4 + out_bytes)

    out = pl.pallas_call(
        _gemm_bn_pprelu_kernel,
        out_shape=jax.ShapeDtypeStruct((N, M_p, Cout_p), out_dtype),
        grid_spec=pltpu.PrefetchScalarGridSpec(
            num_scalar_prefetch=0,
            grid=grid,
            in_specs=[
                pl.BlockSpec((1, TM, Kc_p), lambda n, m, c: (n, m, 0)),
                pl.BlockSpec((Kc_p, TC), lambda n, m, c: (0, c)),
                pl.BlockSpec((8, TC), lambda n, m, c: (0, c)),
            ],
            out_specs=pl.BlockSpec((1, TM, TC), lambda n, m, c: (n, m, c)),
        ),
        compiler_params=pltpu.CompilerParams(
            dimension_semantics=("parallel", "parallel", "parallel"),
            vmem_limit_bytes=vmem_limit),
        cost_estimate=cost,
    )(patches, w, params)

    # Strip M / Cout padding; NHWC -> NCHW to match the PyTorch convention.
    # TODO(synk): keep activations NHWC across layers to skip this transpose.
    out = out[:, :M, :Cout].reshape(N, Ho, Wo, Cout)
    return jnp.transpose(out, (0, 3, 1, 2))


def _reference(x_nchw, weight, gamma, beta, mean, var, s1, s2, stride, eps=1e-5):
    pad = weight.shape[-1] // 2
    conv = jax.lax.conv_general_dilated(
        x_nchw.astype(jnp.float32), weight.astype(jnp.float32),
        window_strides=(stride, stride),
        padding=((pad, pad), (pad, pad)),
        dimension_numbers=("NCHW", "OIHW", "NCHW"))
    sc = gamma / jnp.sqrt(var + eps)
    y = conv * sc[None, :, None, None] + (beta - mean * sc)[None, :, None, None]
    return jnp.maximum(y * s1[None, :, None, None], y * s2[None, :, None, None])


if __name__ == "__main__":
    key = jax.random.PRNGKey(0)
    kx, kw, kg, kb, km, kv = jax.random.split(key, 6)

    N, Cin, H, W = 2, 4, 16, 16
    Cout, K, stride = 8, 3, 1

    x = jax.random.normal(kx, (N, Cin, H, W), dtype=jnp.float32)
    weight = 0.1 * jax.random.normal(kw, (Cout, Cin, K, K), dtype=jnp.float32)

    # BatchNorm2d parameters / running stats (deterministic, non-trivial).
    gamma = 1.0 + 0.1 * jax.random.normal(kg, (Cout,), dtype=jnp.float32)
    beta = 0.1 * jax.random.normal(kb, (Cout,), dtype=jnp.float32)
    running_mean = 0.1 * jax.random.normal(km, (Cout,), dtype=jnp.float32)
    running_var = jnp.abs(jax.random.normal(kv, (Cout,), dtype=jnp.float32)) + 0.5

    # PPReLU per-channel scales at their PyTorch init values.
    pprelu_s1 = jnp.full((Cout,), 1.0, dtype=jnp.float32)
    pprelu_s2 = jnp.full((Cout,), 0.1, dtype=jnp.float32)

    out = conv2d_batch_pprelu(x, weight, gamma, beta, running_mean, running_var,
                              pprelu_s1, pprelu_s2, stride=stride)
    out = jax.block_until_ready(out)

    ref = _reference(x, weight, gamma, beta, running_mean, running_var,
                     pprelu_s1, pprelu_s2, stride)
    assert out.shape == (N, Cout, H, W)
    # bf16 inputs/weights/output around an f32 MXU accumulate -> loose compare.
    assert jnp.allclose(out.astype(jnp.float32), ref, atol=5e-2, rtol=5e-2)

    print("KERNEL_OK")
</pallas_src>

<mosaic_0001>
module attributes {stable_mosaic.version = 11 : i64} {
  func.func @_gemm_bn_pprelu_kernel(%arg0: i32, %arg1: i32, %arg2: i32, %arg3: memref<1x256x48xbf16, #tpu.memory_space<vmem>>, %arg4: memref<48x8xbf16, #tpu.memory_space<vmem>>, %arg5: memref<8x8xf32, #tpu.memory_space<vmem>>, %arg6: memref<1x256x8xbf16, #tpu.memory_space<vmem>>) attributes {dimension_semantics = [#tpu.dimension_semantics<parallel>, #tpu.dimension_semantics<parallel>, #tpu.dimension_semantics<parallel>], iteration_bounds = array<i64: 2, 1, 1>, scalar_prefetch = 0 : i64, scratch_operands = 0 : i64, tpu.core_type = #tpu.core_type<tc>, window_params = [{transform_indices = @transform_0, window_bounds = array<i64: 1, 256, 48>}, {transform_indices = @transform_1, window_bounds = array<i64: 48, 8>}, {transform_indices = @transform_2, window_bounds = array<i64: 8, 8>}, {transform_indices = @transform_3, window_bounds = array<i64: 1, 256, 8>}]} {
    %c0 = arith.constant 0 : index
    %c0_0 = arith.constant 0 : index
    %c0_1 = arith.constant 0 : index
    %0 = vector.load %arg3[%c0, %c0_0, %c0_1] : memref<1x256x48xbf16, #tpu.memory_space<vmem>>, vector<1x256x48xbf16>
    %1 = vector.shape_cast %0 : vector<1x256x48xbf16> to vector<256x48xbf16>
    %c0_2 = arith.constant 0 : index
    %c0_3 = arith.constant 0 : index
    %2 = vector.load %arg4[%c0_2, %c0_3] : memref<48x8xbf16, #tpu.memory_space<vmem>>, vector<48x8xbf16>
    %cst = arith.constant dense<0.000000e+00> : vector<256x8xf32>
    %3 = tpu.matmul %1, %2, %cst {dimension_numbers = #tpu.dot_dimension_numbers<[1], [0], [0], [1], [0, 0, 1, 1], [], []>} : vector<256x48xbf16>, vector<48x8xbf16>, vector<256x8xf32> -> vector<256x8xf32>
    %c0_4 = arith.constant 0 : index
    %c0_5 = arith.constant 0 : index
    %4 = vector.load %arg5[%c0_4, %c0_5] : memref<8x8xf32, #tpu.memory_space<vmem>>, vector<1x8xf32>
    %c1 = arith.constant 1 : index
    %c0_6 = arith.constant 0 : index
    %5 = vector.load %arg5[%c1, %c0_6] : memref<8x8xf32, #tpu.memory_space<vmem>>, vector<1x8xf32>
    %c2 = arith.constant 2 : index
    %c0_7 = arith.constant 0 : index
    %6 = vector.load %arg5[%c2, %c0_7] : memref<8x8xf32, #tpu.memory_space<vmem>>, vector<1x8xf32>
    %7 = vector.broadcast %4 : vector<1x8xf32> to vector<256x8xf32>
    %8 = arith.addf %3, %7 : vector<256x8xf32>
    %9 = vector.broadcast %5 : vector<1x8xf32> to vector<256x8xf32>
    %10 = arith.mulf %8, %9 : vector<256x8xf32>
    %11 = vector.broadcast %6 : vector<1x8xf32> to vector<256x8xf32>
    %12 = arith.mulf %8, %11 : vector<256x8xf32>
    %13 = arith.maximumf %10, %12 : vector<256x8xf32>
    %14 = arith.truncf %13 : vector<256x8xf32> to vector<256x8xbf16>
    %c0_8 = arith.constant 0 : index
    %c0_9 = arith.constant 0 : index
    %c0_10 = arith.constant 0 : index
    %15 = vector.load %arg6[%c0_8, %c0_9, %c0_10] : memref<1x256x8xbf16, #tpu.memory_space<vmem>>, vector<1x256x8xbf16>
    %16 = vector.shape_cast %15 : vector<1x256x8xbf16> to vector<256x8xbf16>
    %17 = vector.shape_cast %14 : vector<256x8xbf16> to vector<1x256x8xbf16>
    tpu.vector_store %arg6[%c0_8, %c0_9, %c0_10], %17 {strides = array<i32>} : memref<1x256x8xbf16, #tpu.memory_space<vmem>>, vector<1x256x8xbf16>,
    return
  }
  func.func @transform_0(%arg0: i32, %arg1: i32, %arg2: i32) -> (i32, i32, i32) {
    %c0_i32 = arith.constant 0 : i32
    %c0_i32_0 = arith.constant 0 : i32
    return %arg0, %arg1, %c0_i32 : i32, i32, i32
  }
  func.func @transform_1(%arg0: i32, %arg1: i32, %arg2: i32) -> (i32, i32) {
    %c0_i32 = arith.constant 0 : i32
    %c0_i32_0 = arith.constant 0 : i32
    return %c0_i32, %arg2 : i32, i32
  }
  func.func @transform_2(%arg0: i32, %arg1: i32, %arg2: i32) -> (i32, i32) {
    %c0_i32 = arith.constant 0 : i32
    %c0_i32_0 = arith.constant 0 : i32
    return %c0_i32, %arg2 : i32, i32
  }
  func.func @transform_3(%arg0: i32, %arg1: i32, %arg2: i32) -> (i32, i32, i32) {
    %c0_i32 = arith.constant 0 : i32
    return %arg0, %arg1, %arg2 : i32, i32, i32
  }
}

</mosaic_0001>

<bundles_post_ra>
// kernel: tpu_custom_call.1
= control target key start
LH: loop header
LB: loop body
LE: loop exit
PB: predicated region body
PF: predicated region fallthrough
CT: control target
= control target key end

     0   :  { %s1037_s12 = smov 0   ;;  %s1039_s13 = smov 0   ;;  %s1297_s0 = inlined_call_operand.vmem [shape: bf16[2,256,48], index: 0, kind: input, shape index: {}]   ;;  %s1298_s1 = inlined_call_operand.vmem [shape: bf16[48,8], index: 1, kind: input, shape index: {}]   ;;  %s1299_s2 = inlined_call_operand.vmem [shape: f32[8,8], index: 2, kind: input, shape index: {}]   ;;  %s1300_s3 = inlined_call_operand.vmem [shape: bf16[2,256,8], index: 3, kind: output, shape index: {}]  }
   0x1   :  { %s1041_s14 = smov 0  }
   0x2 LB: > { %s32_s15 = sadd.s32 1, %s1011_s13  ;;  %p837_p0 = scmp.ge.s32.totalorder %s1015_s14, 1  ;;  %s1015_s14 = sphi %s1041_s14, %s13_s14   ;;  %s1011_s13 = sphi %s1039_s13, %s1302_s13   ;;  %s1007_s12 = sphi %s1037_s12, %s1301_s12  }
   0x3   : > { %p34_p1 = scmp.ge.s32.totalorder %s32_s15, 2  ;;  %p185_p2 = scmp.lt.s32.totalorder %s1015_s14, 3 }
   0x5   : > { %s1304_s15 = smov (%p34_p1, %s32_s15), 0  ;;  %p186_p3 = pnand %p837_p0, %p185_p2 }
   0x6   : > { %p229_p4 = scmp.lt.s32.totalorder (!%p186_p3), %s1007_s12, 1 }
   0x7   : > { %189 = sbr.rel (%p186_p3) target bundleno = 223 (0xdf), region = 32 }
   0xc   : > { %v956_v0 = vld [vmem:[%s1298_s1 + $0x10] sm:$0xff]  ;;  %v955_v1 = vld [vmem:[%s1298_s1 + $0x8] sm:$0xff]  ;;  %s1306_s12 = smov (!%p229_p4, %s1007_s12), 1  ;;  %v954_v2 = vld [vmem:[%s1298_s1] sm:$0xff]  ;;  %vm400_vm0 = vcmask 392192   ;;  %vm668_vm1 = vcmask 60416  }
   0xd   : > { %454 = vmatpush.bf16.msra.mxu0 %v956_v0  ;;  %957 = vmatpush.bf16.msra.mxu1 %v956_v0  ;;  %s936_s20 = sshll.u32 %s1306_s12, 7  ;;  %v1109_v19 = vld [vmem:[%s1299_s2] ss:$0 sm:$0xff]  ;;  %v1114_v20 = vld [vmem:[%s1299_s2 + $0x1] ss:$0 sm:$0xff] }
   0xe   : > { %958 = vmatpush.bf16.msra.mxu2 %v956_v0  ;;  %959 = vmatpush.bf16.msra.mxu3 %v956_v0  ;;  %s1072_s25 = scalar_lea.vmem %s1297_s0, %s936_s20  ;;  %v1119_v21 = vld [vmem:[%s1299_s2 + $0x2] ss:$0 sm:$0xff]  ;;  %s1132_s7 = scalar_lea.vmem %s1300_s3, %s936_s20 }
   0xf   : > { %v938_v3 = vld [vmem:[%s1072_s25] sm:$0xff]  ;;  %v939_v7 = vld [vmem:[%s1072_s25 + $0x8] sm:$0xff]  ;;  %v940_v11 = vld [vmem:[%s1072_s25 + $0x10] sm:$0xff] }
  0x10   : > { %v942_v4 = vld [vmem:[%s1072_s25 + $0x20] sm:$0xff]  ;;  %v943_v8 = vld [vmem:[%s1072_s25 + $0x28] sm:$0xff]  ;;  %v944_v12 = vld [vmem:[%s1072_s25 + $0x30] sm:$0xff] }
  0x11   : > { %455 = vmatpush.bf16.msra.mxu0 %v955_v1  ;;  %960 = vmatpush.bf16.msra.mxu1 %v955_v1  ;;  %v946_v5 = vld [vmem:[%s1072_s25 + $0x40] sm:$0xff]  ;;  %v947_v9 = vld [vmem:[%s1072_s25 + $0x48] sm:$0xff]  ;;  %v948_v13 = vld [vmem:[%s1072_s25 + $0x50] sm:$0xff] }
  0x12   : > { %961 = vmatpush.bf16.msra.mxu2 %v955_v1  ;;  %962 = vmatpush.bf16.msra.mxu3 %v955_v1  ;;  %v950_v6 = vld [vmem:[%s1072_s25 + $0x60] sm:$0xff]  ;;  %v951_v10 = vld [vmem:[%s1072_s25 + $0x68] sm:$0xff]  ;;  %v952_v14 = vld [vmem:[%s1072_s25 + $0x70] sm:$0xff] }
  0x13   : > { %v941_v15 = vld [vmem:[%s1072_s25 + $0x18] sm:$0xff] }
  0x14   : > { %v945_v16 = vld [vmem:[%s1072_s25 + $0x38] sm:$0xff] }
  0x15   : > { %456 = vmatpush.bf16.msra.mxu0 %v954_v2  ;;  %963 = vmatpush.bf16.msra.mxu1 %v954_v2  ;;  %v949_v17 = vld [vmem:[%s1072_s25 + $0x58] sm:$0xff] }
  0x16   : > { %964 = vmatpush.bf16.msra.mxu2 %v954_v2  ;;  %965 = vmatpush.bf16.msra.mxu3 %v954_v2  ;;  %v953_v18 = vld [vmem:[%s1072_s25 + $0x78] sm:$0xff] }
  0x18   : > { %918 = vmatmul.msk.bf16.vlgmr.msra.gmra.mxu0 %vm400_vm0, %v938_v3  ;;  %922 = vmatmul.msk.bf16.vlgmr.msra.gmra.mxu1 %vm400_vm0, %v942_v4 }
  0x19   : > { %926 = vmatmul.msk.bf16.vlgmr.msra.gmra.mxu2 %vm400_vm0, %v946_v5  ;;  %930 = vmatmul.msk.bf16.vlgmr.msra.gmra.mxu3 %vm400_vm0, %v950_v6 }
  0x28   : > { %919 = vmatmul.msk.bf16.gmra.mxu0 %vm400_vm0, %v939_v7  ;;  %923 = vmatmul.msk.bf16.gmra.mxu1 %vm400_vm0, %v943_v8 }
  0x29   : > { %927 = vmatmul.msk.bf16.gmra.mxu2 %vm400_vm0, %v947_v9  ;;  %931 = vmatmul.msk.bf16.gmra.mxu3 %vm400_vm0, %v951_v10 }
  0x38   : > { %920 = vmatmul.msk.bf16.gmra.mxu0 %vm400_vm0, %v940_v11  ;;  %924 = vmatmul.msk.bf16.gmra.mxu1 %vm400_vm0, %v944_v12 }
  0x39   : > { %928 = vmatmul.msk.bf16.gmra.mxu2 %vm400_vm0, %v948_v13  ;;  %932 = vmatmul.msk.bf16.gmra.mxu3 %vm400_vm0, %v952_v14 }
  0x48   : > { %921 = vmatmul.msk.bf16.gmra.mxu0 %vm400_vm0, %v941_v15  ;;  %925 = vmatmul.msk.bf16.gmra.mxu1 %vm400_vm0, %v945_v16 }
  0x49   : > { %929 = vmatmul.msk.bf16.gmra.mxu2 %vm400_vm0, %v949_v17  ;;  %933 = vmatmul.msk.bf16.gmra.mxu3 %vm400_vm0, %v953_v18 }
  0x95   : > { %v458_v22 = vpop.f32.mrf.mxu0  ;;  %v478_v23 = vpop.f32.mrf.mxu1 }
  0x96   : > { %v459_v24 = vadd.f32 %v1109_v19, %v458_v22  ;;  %v479_v25 = vadd.f32 %v1109_v19, %v478_v23 }
  0x98   : > { %v539_v26 = vmul.f32 %v1114_v20, %v459_v24  ;;  %v572_v27 = vmul.f32 %v1119_v21, %v459_v24  ;;  %v547_v28 = vmul.f32 %v1114_v20, %v479_v25  ;;  %v580_v29 = vmul.f32 %v1119_v21, %v479_v25 }
  0x9a   : > { %v604_v30 = vmax.f32 %v539_v26, %v572_v27  ;;  %v612_v31 = vmax.f32 %v547_v28, %v580_v29 }
  0x9c   : > { %v636_v32 = vpack.c.bf16 %v604_v30, %v604_v30  ;;  %v644_v33 = vpack.c.bf16 %v612_v31, %v612_v31  ;;  %v498_v34 = vpop.f32.mrf.mxu2  ;;  %v518_v35 = vpop.f32.mrf.mxu3 }
  0x9d   : > { %v499_v36 = vadd.f32 %v1109_v19, %v498_v34  ;;  %v519_v37 = vadd.f32 %v1109_v19, %v518_v35  ;;  %v460_v38 = vpop.f32.mrf.mxu0  ;;  %v480_v39 = vpop.f32.mrf.mxu1 }
  0x9e   : > { %669 = vst.msk [vmem:[%s1132_s7] sm:$0xf] %vm668_vm1, %v636_v32  ;;  %v461_v40 = vadd.f32 %v1109_v19, %v460_v38  ;;  %v481_v41 = vadd.f32 %v1109_v19, %v480_v39 }
  0x9f   : > { %677 = vst.msk [vmem:[%s1132_s7 + $0x20] sm:$0xf] %vm668_vm1, %v644_v33  ;;  %v555_v42 = vmul.f32 %v1114_v20, %v499_v36  ;;  %v588_v43 = vmul.f32 %v1119_v21, %v499_v36  ;;  %v563_v44 = vmul.f32 %v1114_v20, %v519_v37  ;;  %v596_v45 = vmul.f32 %v1119_v21, %v519_v37 }
  0xa0   : > { %v540_v46 = vmul.f32 %v1114_v20, %v461_v40  ;;  %v573_v47 = vmul.f32 %v1119_v21, %v461_v40  ;;  %v548_v48 = vmul.f32 %v1114_v20, %v481_v41  ;;  %v581_v49 = vmul.f32 %v1119_v21, %v481_v41 }
  0xa1   : > { %v620_v50 = vmax.f32 %v555_v42, %v588_v43  ;;  %v628_v51 = vmax.f32 %v563_v44, %v596_v45 }
  0xa2   : > { %v605_v52 = vmax.f32 %v540_v46, %v573_v47  ;;  %v613_v53 = vmax.f32 %v548_v48, %v581_v49 }
  0xa3   : > { %v652_v54 = vpack.c.bf16 %v620_v50, %v620_v50  ;;  %v660_v55 = vpack.c.bf16 %v628_v51, %v628_v51 }
  0xa4   : > { %v637_v56 = vpack.c.bf16 %v605_v52, %v605_v52  ;;  %v645_v57 = vpack.c.bf16 %v613_v53, %v613_v53  ;;  %v500_v58 = vpop.f32.mrf.mxu2  ;;  %v520_v59 = vpop.f32.mrf.mxu3 }
  0xa5   : > { %685 = vst.msk [vmem:[%s1132_s7 + $0x40] sm:$0xf] %vm668_vm1, %v652_v54  ;;  %v501_v60 = vadd.f32 %v1109_v19, %v500_v58  ;;  %v521_v61 = vadd.f32 %v1109_v19, %v520_v59  ;;  %v463_v62 = vpop.f32.mrf.mxu0  ;;  %v483_v63 = vpop.f32.mrf.mxu1 }
  0xa6   : > { %693 = vst.msk [vmem:[%s1132_s7 + $0x60] sm:$0xf] %vm668_vm1, %v660_v55  ;;  %v464_v0 = vadd.f32 %v1109_v19, %v463_v62  ;;  %v484_v1 = vadd.f32 %v1109_v19, %v483_v63 }
  0xa7   : > { %670 = vst.msk [vmem:[%s1132_s7 + $0x4] sm:$0xf] %vm668_vm1, %v637_v56  ;;  %v556_v2 = vmul.f32 %v1114_v20, %v501_v60  ;;  %v589_v3 = vmul.f32 %v1119_v21, %v501_v60  ;;  %v564_v4 = vmul.f32 %v1114_v20, %v521_v61  ;;  %v597_v5 = vmul.f32 %v1119_v21, %v521_v61 }
  0xa8   : > { %678 = vst.msk [vmem:[%s1132_s7 + $0x24] sm:$0xf] %vm668_vm1, %v645_v57  ;;  %v541_v6 = vmul.f32 %v1114_v20, %v464_v0  ;;  %v574_v7 = vmul.f32 %v1119_v21, %v464_v0  ;;  %v549_v8 = vmul.f32 %v1114_v20, %v484_v1  ;;  %v582_v9 = vmul.f32 %v1119_v21, %v484_v1 }
  0xa9   : > { %v621_v10 = vmax.f32 %v556_v2, %v589_v3  ;;  %v629_v11 = vmax.f32 %v564_v4, %v597_v5 }
  0xaa   : > { %v606_v12 = vmax.f32 %v541_v6, %v574_v7  ;;  %v614_v13 = vmax.f32 %v549_v8, %v582_v9 }
  0xab   : > { %v653_v14 = vpack.c.bf16 %v621_v10, %v621_v10  ;;  %v661_v15 = vpack.c.bf16 %v629_v11, %v629_v11 }
  0xac   : > { %v638_v16 = vpack.c.bf16 %v606_v12, %v606_v12  ;;  %v646_v17 = vpack.c.bf16 %v614_v13, %v614_v13  ;;  %v503_v18 = vpop.f32.mrf.mxu2  ;;  %v523_v22 = vpop.f32.mrf.mxu3 }
  0xad   : > { %686 = vst.msk [vmem:[%s1132_s7 + $0x44] sm:$0xf] %vm668_vm1, %v653_v14  ;;  %v504_v23 = vadd.f32 %v1109_v19, %v503_v18  ;;  %v524_v24 = vadd.f32 %v1109_v19, %v523_v22  ;;  %v465_v25 = vpop.f32.mrf.mxu0  ;;  %v485_v26 = vpop.f32.mrf.mxu1 }
  0xae   : > { %694 = vst.msk [vmem:[%s1132_s7 + $0x64] sm:$0xf] %vm668_vm1, %v661_v15  ;;  %v466_v27 = vadd.f32 %v1109_v19, %v465_v25  ;;  %v486_v28 = vadd.f32 %v1109_v19, %v485_v26 }
  0xaf   : > { %671 = vst.msk [vmem:[%s1132_s7 + $0x8] sm:$0xf] %vm668_vm1, %v638_v16  ;;  %v557_v29 = vmul.f32 %v1114_v20, %v504_v23  ;;  %v590_v30 = vmul.f32 %v1119_v21, %v504_v23  ;;  %v565_v31 = vmul.f32 %v1114_v20, %v524_v24  ;;  %v598_v32 = vmul.f32 %v1119_v21, %v524_v24 }
  0xb0   : > { %679 = vst.msk [vmem:[%s1132_s7 + $0x28] sm:$0xf] %vm668_vm1, %v646_v17  ;;  %v542_v33 = vmul.f32 %v1114_v20, %v466_v27  ;;  %v575_v34 = vmul.f32 %v1119_v21, %v466_v27  ;;  %v550_v35 = vmul.f32 %v1114_v20, %v486_v28  ;;  %v583_v36 = vmul.f32 %v1119_v21, %v486_v28 }
  0xb1   : > { %v622_v37 = vmax.f32 %v557_v29, %v590_v30  ;;  %v630_v38 = vmax.f32 %v565_v31, %v598_v32 }
  0xb2   : > { %v607_v39 = vmax.f32 %v542_v33, %v575_v34  ;;  %v615_v40 = vmax.f32 %v550_v35, %v583_v36 }
  0xb3   : > { %v654_v41 = vpack.c.bf16 %v622_v37, %v622_v37  ;;  %v662_v42 = vpack.c.bf16 %v630_v38, %v630_v38 }
  0xb4   : > { %v639_v43 = vpack.c.bf16 %v607_v39, %v607_v39  ;;  %v647_v44 = vpack.c.bf16 %v615_v40, %v615_v40  ;;  %v505_v45 = vpop.f32.mrf.mxu2  ;;  %v525_v46 = vpop.f32.mrf.mxu3 }
  0xb5   : > { %687 = vst.msk [vmem:[%s1132_s7 + $0x48] sm:$0xf] %vm668_vm1, %v654_v41  ;;  %v506_v47 = vadd.f32 %v1109_v19, %v505_v45  ;;  %v526_v48 = vadd.f32 %v1109_v19, %v525_v46  ;;  %v468_v49 = vpop.f32.mrf.mxu0  ;;  %v488_v50 = vpop.f32.mrf.mxu1 }
  0xb6   : > { %695 = vst.msk [vmem:[%s1132_s7 + $0x68] sm:$0xf] %vm668_vm1, %v662_v42  ;;  %v469_v51 = vadd.f32 %v1109_v19, %v468_v49  ;;  %v489_v52 = vadd.f32 %v1109_v19, %v488_v50 }
  0xb7   : > { %672 = vst.msk [vmem:[%s1132_s7 + $0xc] sm:$0xf] %vm668_vm1, %v639_v43  ;;  %v558_v53 = vmul.f32 %v1114_v20, %v506_v47  ;;  %v591_v54 = vmul.f32 %v1119_v21, %v506_v47  ;;  %v566_v55 = vmul.f32 %v1114_v20, %v526_v48  ;;  %v599_v56 = vmul.f32 %v1119_v21, %v526_v48 }
  0xb8   : > { %680 = vst.msk [vmem:[%s1132_s7 + $0x2c] sm:$0xf] %vm668_vm1, %v647_v44  ;;  %v543_v57 = vmul.f32 %v1114_v20, %v469_v51  ;;  %v576_v58 = vmul.f32 %v1119_v21, %v469_v51  ;;  %v551_v59 = vmul.f32 %v1114_v20, %v489_v52  ;;  %v584_v60 = vmul.f32 %v1119_v21, %v489_v52 }
  0xb9   : > { %v623_v61 = vmax.f32 %v558_v53, %v591_v54  ;;  %v631_v62 = vmax.f32 %v566_v55, %v599_v56 }
  0xba   : > { %v608_v63 = vmax.f32 %v543_v57, %v576_v58  ;;  %v616_v0 = vmax.f32 %v551_v59, %v584_v60 }
  0xbb   : > { %v655_v1 = vpack.c.bf16 %v623_v61, %v623_v61  ;;  %v663_v2 = vpack.c.bf16 %v631_v62, %v631_v62 }
  0xbc   : > { %v640_v3 = vpack.c.bf16 %v608_v63, %v608_v63  ;;  %v648_v4 = vpack.c.bf16 %v616_v0, %v616_v0  ;;  %v508_v5 = vpop.f32.mrf.mxu2  ;;  %v528_v6 = vpop.f32.mrf.mxu3 }
  0xbd   : > { %688 = vst.msk [vmem:[%s1132_s7 + $0x4c] sm:$0xf] %vm668_vm1, %v655_v1  ;;  %v509_v7 = vadd.f32 %v1109_v19, %v508_v5  ;;  %v529_v8 = vadd.f32 %v1109_v19, %v528_v6  ;;  %v470_v9 = vpop.f32.mrf.mxu0  ;;  %v490_v10 = vpop.f32.mrf.mxu1 }
  0xbe   : > { %696 = vst.msk [vmem:[%s1132_s7 + $0x6c] sm:$0xf] %vm668_vm1, %v663_v2  ;;  %v471_v11 = vadd.f32 %v1109_v19, %v470_v9  ;;  %v491_v12 = vadd.f32 %v1109_v19, %v490_v10 }
  0xbf   : > { %673 = vst.msk [vmem:[%s1132_s7 + $0x10] sm:$0xf] %vm668_vm1, %v640_v3  ;;  %v559_v13 = vmul.f32 %v1114_v20, %v509_v7  ;;  %v592_v14 = vmul.f32 %v1119_v21, %v509_v7  ;;  %v567_v15 = vmul.f32 %v1114_v20, %v529_v8  ;;  %v600_v16 = vmul.f32 %v1119_v21, %v529_v8 }
  0xc0   : > { %681 = vst.msk [vmem:[%s1132_s7 + $0x30] sm:$0xf] %vm668_vm1, %v648_v4  ;;  %v544_v17 = vmul.f32 %v1114_v20, %v471_v11  ;;  %v577_v18 = vmul.f32 %v1119_v21, %v471_v11  ;;  %v552_v22 = vmul.f32 %v1114_v20, %v491_v12  ;;  %v585_v23 = vmul.f32 %v1119_v21, %v491_v12 }
  0xc1   : > { %v624_v24 = vmax.f32 %v559_v13, %v592_v14  ;;  %v632_v25 = vmax.f32 %v567_v15, %v600_v16 }
  0xc2   : > { %v609_v26 = vmax.f32 %v544_v17, %v577_v18  ;;  %v617_v27 = vmax.f32 %v552_v22, %v585_v23 }
  0xc3   : > { %v656_v28 = vpack.c.bf16 %v624_v24, %v624_v24  ;;  %v664_v29 = vpack.c.bf16 %v632_v25, %v632_v25 }
  0xc4   : > { %v641_v30 = vpack.c.bf16 %v609_v26, %v609_v26  ;;  %v649_v31 = vpack.c.bf16 %v617_v27, %v617_v27  ;;  %v510_v32 = vpop.f32.mrf.mxu2  ;;  %v530_v33 = vpop.f32.mrf.mxu3 }
  0xc5   : > { %689 = vst.msk [vmem:[%s1132_s7 + $0x50] sm:$0xf] %vm668_vm1, %v656_v28  ;;  %v511_v34 = vadd.f32 %v1109_v19, %v510_v32  ;;  %v531_v35 = vadd.f32 %v1109_v19, %v530_v33  ;;  %v473_v36 = vpop.f32.mrf.mxu0  ;;  %v493_v37 = vpop.f32.mrf.mxu1 }
  0xc6   : > { %697 = vst.msk [vmem:[%s1132_s7 + $0x70] sm:$0xf] %vm668_vm1, %v664_v29  ;;  %v474_v38 = vadd.f32 %v1109_v19, %v473_v36  ;;  %v494_v39 = vadd.f32 %v1109_v19, %v493_v37 }
  0xc7   : > { %674 = vst.msk [vmem:[%s1132_s7 + $0x14] sm:$0xf] %vm668_vm1, %v641_v30  ;;  %v560_v40 = vmul.f32 %v1114_v20, %v511_v34  ;;  %v593_v41 = vmul.f32 %v1119_v21, %v511_v34  ;;  %v568_v42 = vmul.f32 %v1114_v20, %v531_v35  ;;  %v601_v43 = vmul.f32 %v1119_v21, %v531_v35 }
  0xc8   : > { %682 = vst.msk [vmem:[%s1132_s7 + $0x34] sm:$0xf] %vm668_vm1, %v649_v31  ;;  %v545_v44 = vmul.f32 %v1114_v20, %v474_v38  ;;  %v578_v45 = vmul.f32 %v1119_v21, %v474_v38  ;;  %v553_v46 = vmul.f32 %v1114_v20, %v494_v39  ;;  %v586_v47 = vmul.f32 %v1119_v21, %v494_v39 }
  0xc9   : > { %v625_v48 = vmax.f32 %v560_v40, %v593_v41  ;;  %v633_v49 = vmax.f32 %v568_v42, %v601_v43 }
  0xca   : > { %v610_v50 = vmax.f32 %v545_v44, %v578_v45  ;;  %v618_v51 = vmax.f32 %v553_v46, %v586_v47 }
  0xcb   : > { %v657_v52 = vpack.c.bf16 %v625_v48, %v625_v48  ;;  %v665_v53 = vpack.c.bf16 %v633_v49, %v633_v49 }
  0xcc   : > { %v642_v54 = vpack.c.bf16 %v610_v50, %v610_v50  ;;  %v650_v55 = vpack.c.bf16 %v618_v51, %v618_v51  ;;  %v513_v56 = vpop.f32.mrf.mxu2  ;;  %v533_v57 = vpop.f32.mrf.mxu3 }
  0xcd   : > { %690 = vst.msk [vmem:[%s1132_s7 + $0x54] sm:$0xf] %vm668_vm1, %v657_v52  ;;  %v514_v58 = vadd.f32 %v1109_v19, %v513_v56  ;;  %v534_v59 = vadd.f32 %v1109_v19, %v533_v57  ;;  %v475_v60 = vpop.f32.mrf.mxu0  ;;  %v495_v61 = vpop.f32.mrf.mxu1 }
  0xce   : > { %698 = vst.msk [vmem:[%s1132_s7 + $0x74] sm:$0xf] %vm668_vm1, %v665_v53  ;;  %v476_v62 = vadd.f32 %v1109_v19, %v475_v60  ;;  %v496_v63 = vadd.f32 %v1109_v19, %v495_v61 }
  0xcf   : > { %675 = vst.msk [vmem:[%s1132_s7 + $0x18] sm:$0xf] %vm668_vm1, %v642_v54  ;;  %v561_v0 = vmul.f32 %v1114_v20, %v514_v58  ;;  %v594_v1 = vmul.f32 %v1119_v21, %v514_v58  ;;  %v569_v2 = vmul.f32 %v1114_v20, %v534_v59  ;;  %v602_v3 = vmul.f32 %v1119_v21, %v534_v59 }
  0xd0   : > { %683 = vst.msk [vmem:[%s1132_s7 + $0x38] sm:$0xf] %vm668_vm1, %v650_v55  ;;  %v546_v4 = vmul.f32 %v1114_v20, %v476_v62  ;;  %v579_v5 = vmul.f32 %v1119_v21, %v476_v62  ;;  %v554_v6 = vmul.f32 %v1114_v20, %v496_v63  ;;  %v587_v7 = vmul.f32 %v1119_v21, %v496_v63 }
  0xd1   : > { %v626_v8 = vmax.f32 %v561_v0, %v594_v1  ;;  %v634_v9 = vmax.f32 %v569_v2, %v602_v3 }
  0xd2   : > { %v611_v10 = vmax.f32 %v546_v4, %v579_v5  ;;  %v619_v11 = vmax.f32 %v554_v6, %v587_v7 }
  0xd3   : > { %v658_v12 = vpack.c.bf16 %v626_v8, %v626_v8  ;;  %v666_v13 = vpack.c.bf16 %v634_v9, %v634_v9 }
  0xd4   : > { %v643_v14 = vpack.c.bf16 %v611_v10, %v611_v10  ;;  %v651_v15 = vpack.c.bf16 %v619_v11, %v619_v11  ;;  %v515_v16 = vpop.f32.mrf.mxu2  ;;  %v535_v17 = vpop.f32.mrf.mxu3 }
  0xd5   : > { %691 = vst.msk [vmem:[%s1132_s7 + $0x58] sm:$0xf] %vm668_vm1, %v658_v12  ;;  %v516_v18 = vadd.f32 %v1109_v19, %v515_v16  ;;  %v536_v22 = vadd.f32 %v1109_v19, %v535_v17 }
  0xd6   : > { %699 = vst.msk [vmem:[%s1132_s7 + $0x78] sm:$0xf] %vm668_vm1, %v666_v13 }
  0xd7   : > { %676 = vst.msk [vmem:[%s1132_s7 + $0x1c] sm:$0xf] %vm668_vm1, %v643_v14  ;;  %v562_v23 = vmul.f32 %v1114_v20, %v516_v18  ;;  %v595_v24 = vmul.f32 %v1119_v21, %v516_v18  ;;  %v570_v25 = vmul.f32 %v1114_v20, %v536_v22  ;;  %v603_v26 = vmul.f32 %v1119_v21, %v536_v22 }
  0xd8   : > { %684 = vst.msk [vmem:[%s1132_s7 + $0x3c] sm:$0xf] %vm668_vm1, %v651_v15 }
  0xd9   : > { %v627_v27 = vmax.f32 %v562_v23, %v595_v24  ;;  %v635_v28 = vmax.f32 %v570_v25, %v603_v26 }
  0xdb   : > { %v659_v29 = vpack.c.bf16 %v627_v27, %v627_v27  ;;  %v667_v30 = vpack.c.bf16 %v635_v28, %v635_v28 }
  0xdd   : > { %692 = vst.msk [vmem:[%s1132_s7 + $0x5c] sm:$0xf] %vm668_vm1, %v659_v29 }
  0xde   : > { %700 = vst.msk [vmem:[%s1132_s7 + $0x7c] sm:$0xf] %vm668_vm1, %v667_v30 }
  0xdf PF: > { %s13_s14 = sadd.s32 1, %s1015_s14   ;;  %s1301_s12 = smov %s1011_s13 }
  0xe0   : > { %p10_p5 = scmp.ge.s32.totalorder %s13_s14, 4   ;;  %s1302_s13 = smov %s1304_s15 }
  0xe2   :  { %12 = sbr.rel (!%p10_p5) target bundleno = 2 (0x2), region = 68 }

</bundles_post_ra>
